<compile_context>
chip_gen: v5e
topology: v5e:2x2
jax: 0.10.0
libtpu: 0.0.40
codegen_flags: <defaults>
</compile_context>

<pallas_src>
import functools

import jax
import jax.numpy as jnp
from jax.experimental import pallas as pl
from jax.experimental.pallas import tpu as pltpu


def _round_up(x, m):
    return ((x + m - 1) // m) * m


def _tpu_vmem_bytes():
    try:
        return int(pltpu.get_tpu_info().vmem_capacity_bytes)
    except Exception:
        return 64 * 1024 * 1024  # conservative default (v7x per-TC VMEM)


def ffn_kernel(x_ref, ln_g_ref, ln_b_ref, w1_ref, b1_ref, w2_ref, b2_ref,
               o_ref, *, ln_eps, sub_rows, n_sub, bf16_epilogue):
    """One grid step = one (TILE_T, D) time-tile of one batch element.

    The tile is processed in `n_sub` sub-chunks of `sub_rows` rows each
    (unrolled fori_loop) so the MXU work of chunk j overlaps the VPU/EUP
    epilogue of chunk j-1 instead of serializing matmul1 -> bias/SiLU -> matmul2
    over the full tile.
    """
    ln_g = ln_g_ref[...]                               # (1, D) f32
    ln_b = ln_b_ref[...]                               # (1, D) f32
    epi_dtype = jnp.bfloat16 if bf16_epilogue else jnp.float32
    b1 = b1_ref[...].astype(epi_dtype)                 # (1, H)
    b2 = b2_ref[...]                                   # (1, D) f32

    def chunk(j, carry):
        r0 = pl.multiple_of(j * sub_rows, sub_rows)
        x = x_ref[pl.ds(r0, sub_rows), :].astype(jnp.float32)   # (SUB, D)

        # ---- LayerNorm over the feature dim (statistics in f32) ----
        mean = jnp.mean(x, axis=-1, keepdims=True)
        cent = x - mean
        var = jnp.mean(cent * cent, axis=-1, keepdims=True)
        xn = cent * jax.lax.rsqrt(var + ln_eps)
        xn = (xn * ln_g + ln_b).astype(jnp.bfloat16)

        # ---- Linear 1: (SUB, D) @ (D, H), bf16 MXU, f32 accumulation ----
        h = jnp.dot(xn, w1_ref[...], preferred_element_type=jnp.float32)

        # ---- Bias + SiLU epilogue ----
        # bf16 bias add (half the vregs on v6e/v7x); sigmoid denominator via the
        # EUP approx-reciprocal path instead of a full-precision divide.
        hb = h.astype(epi_dtype) + b1
        sig = pl.reciprocal(1.0 + jnp.exp(-hb).astype(jnp.float32), approx=True)
        act = (hb * sig).astype(jnp.bfloat16)

        # TODO(synk): dropout is identity (inference semantics); training-mode
        # dropout masks are not reproduced here.

        # ---- Linear 2: (SUB, H) @ (H, D), bf16 MXU, f32 accumulation ----
        out = jnp.dot(act, w2_ref[...], preferred_element_type=jnp.float32) + b2
        o_ref[pl.ds(r0, sub_rows), :] = out.astype(o_ref.dtype)
        return carry

    jax.lax.fori_loop(0, n_sub, chunk, 0, unroll=True)


def feed_forward(x, params, *, ln_eps=1e-5, tile_t=None, sub_rows=256):
    """x: (B, T, D) f32.  params: ln_g/ln_b (1,D), w1 (D,H), b1 (1,H),
    w2 (H,D), b2 (1,D).  Returns (B, T, D) f32."""
    B, T, D = x.shape
    H = params["w1"].shape[1]

    # ---- generation-aware VMEM budget ----
    phys_vmem = _tpu_vmem_bytes()
    vmem_ceiling = int(phys_vmem * 0.85)      # headroom for Mosaic internal scratch

    if tile_t is None:
        # 128-MiB parts (v5e/v6e): larger time tiles amortize per-step overhead;
        # v7x (64 MiB per TC): stay at 256.
        tile_t = 512 if phys_vmem >= 96 * 1024 * 1024 else 256

    def vmem_need(tile, sub, w_bufs):
        io = 2 * 2 * tile * D * 4                                # x + out, 2 bufs, f32
        wts = w_bufs * ((D * H + H * D) * 2 + (3 * D + H) * 4)   # bf16 weights + f32 LN/bias
        interm = sub * (16 * D + 16 * H)                         # f32 + bf16 temporaries
        return io + wts + interm + (2 << 20)                     # + slack

    # TILE_T: multiple of 8 (f32 sublane); shrink instead of raising the VMEM cap.
    TILE_T = _round_up(min(tile_t, _round_up(T, 8)), 8)
    SUB = min(sub_rows, TILE_T)
    while TILE_T % SUB:
        SUB //= 2
    while TILE_T > 64 and vmem_need(TILE_T, SUB, 2) > vmem_ceiling:
        TILE_T = max(64, _round_up(TILE_T // 2, 8))
        SUB = min(SUB, TILE_T)
        while TILE_T % SUB:
            SUB //= 2
    n_sub = TILE_T // SUB

    n_t = pl.cdiv(T, TILE_T)
    T_pad = n_t * TILE_T
    # TODO(synk): padded rows run through LN/matmuls and get sliced off; a ragged
    # final block would avoid the wasted MXU work when T % TILE_T is large.
    x_in = jnp.pad(x, ((0, 0), (0, T_pad - T), (0, 0))) if T_pad != T else x

    # bf16 weights for the MXU; LN params / biases stay f32 (cast in-kernel).
    # TODO(synk): very large FFNs (resident bf16 weights >~40 MiB) need an
    # H-streaming third grid axis with an f32 accumulator on v7x.
    w1 = params["w1"].astype(jnp.bfloat16)
    w2 = params["w2"].astype(jnp.bfloat16)
    ln_g = params["ln_g"].astype(jnp.float32)
    ln_b = params["ln_b"].astype(jnp.float32)
    b1 = params["b1"].astype(jnp.float32)
    b2 = params["b2"].astype(jnp.float32)

    # ---- cost estimate for the XLA scheduler ----
    flops = 4 * B * T_pad * D * H                       # two matmuls
    transcendentals = B * T_pad * H                     # sigmoid (exp)
    bytes_accessed = (x_in.size * 4 + B * T_pad * D * 4
                      + w1.size * 2 + w2.size * 2
                      + (ln_g.size + ln_b.size + b1.size + b2.size) * 4)

    def build(single_buffer_weights, bf16_epilogue):
        w_bufs = 1 if single_buffer_weights else 2
        vmem_limit = min(vmem_ceiling,
                         max(32 * 1024 * 1024,
                             int(1.25 * vmem_need(TILE_T, SUB, w_bufs))))

        def resident(shape):
            idx = lambda b, t: (0,) * len(shape)
            if single_buffer_weights:
                # Constant index_map => one VMEM buffer is enough; halves the
                # resident-weight footprint (key on v7x's 64 MiB per-TC VMEM).
                return pl.BlockSpec(shape, idx, pipeline_mode=pl.Buffered(1))
            return pl.BlockSpec(shape, idx)

        kernel = functools.partial(ffn_kernel, ln_eps=ln_eps, sub_rows=SUB,
                                   n_sub=n_sub, bf16_epilogue=bf16_epilogue)

        return pl.pallas_call(
            kernel,
            out_shape=jax.ShapeDtypeStruct((B, T_pad, D), x.dtype),
            grid_spec=pltpu.PrefetchScalarGridSpec(
                num_scalar_prefetch=0,
                grid=(B, n_t),
                in_specs=[
                    pl.BlockSpec((pl.Squeezed(), TILE_T, D),
                                 lambda b, t: (b, t, 0)),       # x tile
                    resident((1, D)),                           # ln gamma
                    resident((1, D)),                           # ln beta
                    resident((D, H)),                           # w1 (bf16)
                    resident((1, H)),                           # b1
                    resident((H, D)),                           # w2 (bf16)
                    resident((1, D)),                           # b2
                ],
                out_specs=pl.BlockSpec((pl.Squeezed(), TILE_T, D),
                                       lambda b, t: (b, t, 0)),
            ),
            compiler_params=pltpu.CompilerParams(
                # Both axes parallel: sharded across the 2 TensorCores on v7x;
                # a no-op on v5e/v6e (single TC).
                dimension_semantics=("parallel", "parallel"),
                vmem_limit_bytes=int(vmem_limit)),
            cost_estimate=pl.CostEstimate(
                flops=int(flops),
                transcendentals=int(transcendentals),
                bytes_accessed=int(bytes_accessed)),
        )

    args = (x_in, ln_g, ln_b, w1, b1, w2, b2)
    try:
        # Fast path: single-buffered resident weights + bf16 bias/SiLU epilogue.
        out = jax.block_until_ready(build(True, True)(*args))
    except Exception:
        # Conservative fallback: default double-buffering, f32 epilogue.
        out = jax.block_until_ready(build(False, False)(*args))

    if T_pad != T:
        out = out[:, :T, :]
    return out


def reference_forward(x, p, *, ln_eps=1e-5):
    """Pure-JAX reference with matching bf16-matmul / f32-accumulate math."""
    mean = x.mean(-1, keepdims=True)
    var = ((x - mean) ** 2).mean(-1, keepdims=True)
    xn = (x - mean) * jax.lax.rsqrt(var + ln_eps) * p["ln_g"][0] + p["ln_b"][0]
    h = jnp.dot(xn.astype(jnp.bfloat16), p["w1"].astype(jnp.bfloat16),
                preferred_element_type=jnp.float32) + p["b1"][0]
    h = h * jax.nn.sigmoid(h)
    out = jnp.dot(h.astype(jnp.bfloat16), p["w2"].astype(jnp.bfloat16),
                  preferred_element_type=jnp.float32) + p["b2"][0]
    return out


def init_params(key, dim, mult=4):
    H = dim * mult
    ks = jax.random.split(key, 6)
    # LayerNorm params (perturbed from the PyTorch init so they are exercised).
    ln_g = 1.0 + 0.1 * jax.random.normal(ks[0], (1, dim), jnp.float32)
    ln_b = 0.1 * jax.random.normal(ks[1], (1, dim), jnp.float32)
    # nn.Linear(dim, H): weight (H, dim) -> stored transposed as (dim, H)
    w1 = jax.random.normal(ks[2], (dim, H), jnp.float32) * (dim ** -0.5)
    b1 = 0.1 * jax.random.normal(ks[3], (1, H), jnp.float32)
    # nn.Linear(H, dim): weight (dim, H) -> stored transposed as (H, dim)
    w2 = jax.random.normal(ks[4], (H, dim), jnp.float32) * (H ** -0.5)
    b2 = 0.1 * jax.random.normal(ks[5], (1, dim), jnp.float32)
    return dict(ln_g=ln_g, ln_b=ln_b, w1=w1, b1=b1, w2=w2, b2=b2)


if __name__ == "__main__":
    B, T, dim, mult = 2, 16, 32, 4

    key = jax.random.PRNGKey(0)
    kx, kp = jax.random.split(key)
    x = jax.random.normal(kx, (B, T, dim), jnp.float32)
    params = init_params(kp, dim, mult)

    out = feed_forward(x, params)
    out = jax.block_until_ready(out)

    ref = reference_forward(x, params)
    assert out.shape == (B, T, dim)
    assert jnp.allclose(out, ref, rtol=3e-2, atol=3e-2), "mismatch vs reference"

    print("KERNEL_OK")
</pallas_src>

<mosaic_0001>
module attributes {stable_mosaic.version = 11 : i64} {
  func.func @ffn_kernel(%arg0: i32, %arg1: i32, %arg2: memref<1x16x32xf32, #tpu.memory_space<vmem>>, %arg3: memref<1x32xf32, #tpu.memory_space<vmem>>, %arg4: memref<1x32xf32, #tpu.memory_space<vmem>>, %arg5: memref<32x128xbf16, #tpu.memory_space<vmem>>, %arg6: memref<1x128xf32, #tpu.memory_space<vmem>>, %arg7: memref<128x32xbf16, #tpu.memory_space<vmem>>, %arg8: memref<1x32xf32, #tpu.memory_space<vmem>>, %arg9: memref<1x16x32xf32, #tpu.memory_space<vmem>>) attributes {dimension_semantics = [#tpu.dimension_semantics<parallel>, #tpu.dimension_semantics<parallel>], iteration_bounds = array<i64: 2, 1>, scalar_prefetch = 0 : i64, scratch_operands = 0 : i64, tpu.core_type = #tpu.core_type<tc>, window_params = [{transform_indices = @transform_0, window_bounds = array<i64: 1, 16, 32>}, {pipeline_mode = #tpu.pipeline_mode<synchronous>, transform_indices = @transform_1, window_bounds = array<i64: 1, 32>}, {pipeline_mode = #tpu.pipeline_mode<synchronous>, transform_indices = @transform_2, window_bounds = array<i64: 1, 32>}, {pipeline_mode = #tpu.pipeline_mode<synchronous>, transform_indices = @transform_3, window_bounds = array<i64: 32, 128>}, {pipeline_mode = #tpu.pipeline_mode<synchronous>, transform_indices = @transform_4, window_bounds = array<i64: 1, 128>}, {pipeline_mode = #tpu.pipeline_mode<synchronous>, transform_indices = @transform_5, window_bounds = array<i64: 128, 32>}, {pipeline_mode = #tpu.pipeline_mode<synchronous>, transform_indices = @transform_6, window_bounds = array<i64: 1, 32>}, {transform_indices = @transform_7, window_bounds = array<i64: 1, 16, 32>}]} {
    %c0 = arith.constant 0 : index
    %c0_0 = arith.constant 0 : index
    %0 = vector.load %arg3[%c0, %c0_0] : memref<1x32xf32, #tpu.memory_space<vmem>>, vector<1x32xf32>
    %c0_1 = arith.constant 0 : index
    %c0_2 = arith.constant 0 : index
    %1 = vector.load %arg4[%c0_1, %c0_2] : memref<1x32xf32, #tpu.memory_space<vmem>>, vector<1x32xf32>
    %c0_3 = arith.constant 0 : index
    %c0_4 = arith.constant 0 : index
    %2 = vector.load %arg6[%c0_3, %c0_4] : memref<1x128xf32, #tpu.memory_space<vmem>>, vector<1x128xf32>
    %3 = arith.truncf %2 : vector<1x128xf32> to vector<1x128xbf16>
    %c0_5 = arith.constant 0 : index
    %c0_6 = arith.constant 0 : index
    %4 = vector.load %arg8[%c0_5, %c0_6] : memref<1x32xf32, #tpu.memory_space<vmem>>, vector<1x32xf32>
    %c0_i32 = arith.constant 0 : i32
    %c16_i32 = arith.constant 16 : i32
    %5 = arith.muli %c0_i32, %c16_i32 : i32
    %6 = tpu.assume_multiple %5, 16 : i32
    %c0_7 = arith.constant 0 : index
    %7 = arith.index_cast %6 : i32 to index
    %c0_8 = arith.constant 0 : index
    %8 = vector.load %arg2[%c0_7, %7, %c0_8] : memref<1x16x32xf32, #tpu.memory_space<vmem>>, vector<1x16x32xf32>
    %9 = vector.shape_cast %8 : vector<1x16x32xf32> to vector<16x32xf32>
    %cst = arith.constant dense<0.000000e+00> : vector<16xf32>
    %10 = vector.multi_reduction <add>, %9, %cst [1] : vector<16x32xf32> to vector<16xf32>
    %11 = vector.shape_cast %10 : vector<16xf32> to vector<16x1xf32>
    %cst_9 = arith.constant 3.200000e+01 : f32
    %12 = vector.broadcast %cst_9 : f32 to vector<16x1xf32>
    %13 = arith.divf %11, %12 : vector<16x1xf32>
    %14 = vector.broadcast %13 : vector<16x1xf32> to vector<16x32xf32>
    %15 = arith.subf %9, %14 : vector<16x32xf32>
    %16 = arith.mulf %15, %15 : vector<16x32xf32>
    %cst_10 = arith.constant dense<0.000000e+00> : vector<16xf32>
    %17 = vector.multi_reduction <add>, %16, %cst_10 [1] : vector<16x32xf32> to vector<16xf32>
    %18 = vector.shape_cast %17 : vector<16xf32> to vector<16x1xf32>
    %cst_11 = arith.constant 3.200000e+01 : f32
    %19 = vector.broadcast %cst_11 : f32 to vector<16x1xf32>
    %20 = arith.divf %18, %19 : vector<16x1xf32>
    %cst_12 = arith.constant 9.99999974E-6 : f32
    %21 = vector.broadcast %cst_12 : f32 to vector<16x1xf32>
    %22 = arith.addf %20, %21 : vector<16x1xf32>
    %23 = math.rsqrt %22 : vector<16x1xf32>
    %24 = vector.broadcast %23 : vector<16x1xf32> to vector<16x32xf32>
    %25 = arith.mulf %15, %24 : vector<16x32xf32>
    %26 = vector.broadcast %0 : vector<1x32xf32> to vector<16x32xf32>
    %27 = arith.mulf %25, %26 : vector<16x32xf32>
    %28 = vector.broadcast %1 : vector<1x32xf32> to vector<16x32xf32>
    %29 = arith.addf %27, %28 : vector<16x32xf32>
    %30 = arith.truncf %29 : vector<16x32xf32> to vector<16x32xbf16>
    %c0_13 = arith.constant 0 : index
    %c0_14 = arith.constant 0 : index
    %31 = vector.load %arg5[%c0_13, %c0_14] : memref<32x128xbf16, #tpu.memory_space<vmem>>, vector<32x128xbf16>
    %cst_15 = arith.constant dense<0.000000e+00> : vector<16x128xf32>
    %32 = tpu.matmul %30, %31, %cst_15 {dimension_numbers = #tpu.dot_dimension_numbers<[1], [0], [0], [1], [0, 0, 1, 1], [], []>} : vector<16x32xbf16>, vector<32x128xbf16>, vector<16x128xf32> -> vector<16x128xf32>
    %33 = arith.truncf %32 : vector<16x128xf32> to vector<16x128xbf16>
    %34 = vector.broadcast %3 : vector<1x128xbf16> to vector<16x128xbf16>
    %35 = arith.addf %33, %34 : vector<16x128xbf16>
    %cst_16 = arith.constant 0.000000e+00 : bf16
    %36 = vector.broadcast %cst_16 : bf16 to vector<16x128xbf16>
    %37 = arith.subf %36, %35 : vector<16x128xbf16>
    %38 = math.exp %37 : vector<16x128xbf16>
    %39 = arith.extf %38 : vector<16x128xbf16> to vector<16x128xf32>
    %cst_17 = arith.constant 1.000000e+00 : f32
    %40 = vector.broadcast %cst_17 : f32 to vector<16x128xf32>
    %41 = arith.addf %40, %39 : vector<16x128xf32>
    %42 = tpu.reciprocal %41 {approx = true} : vector<16x128xf32> -> vector<16x128xf32>
    %43 = arith.extf %35 : vector<16x128xbf16> to vector<16x128xf32>
    %44 = arith.mulf %43, %42 : vector<16x128xf32>
    %45 = arith.truncf %44 : vector<16x128xf32> to vector<16x128xbf16>
    %c0_18 = arith.constant 0 : index
    %c0_19 = arith.constant 0 : index
    %46 = vector.load %arg7[%c0_18, %c0_19] : memref<128x32xbf16, #tpu.memory_space<vmem>>, vector<128x32xbf16>
    %cst_20 = arith.constant dense<0.000000e+00> : vector<16x32xf32>
    %47 = tpu.matmul %45, %46, %cst_20 {dimension_numbers = #tpu.dot_dimension_numbers<[1], [0], [0], [1], [0, 0, 1, 1], [], []>} : vector<16x128xbf16>, vector<128x32xbf16>, vector<16x32xf32> -> vector<16x32xf32>
    %48 = vector.broadcast %4 : vector<1x32xf32> to vector<16x32xf32>
    %49 = arith.addf %47, %48 : vector<16x32xf32>
    %c0_21 = arith.constant 0 : index
    %50 = arith.index_cast %6 : i32 to index
    %c0_22 = arith.constant 0 : index
    %51 = vector.load %arg9[%c0_21, %50, %c0_22] : memref<1x16x32xf32, #tpu.memory_space<vmem>>, vector<1x16x32xf32>
    %52 = vector.shape_cast %51 : vector<1x16x32xf32> to vector<16x32xf32>
    %53 = vector.shape_cast %49 : vector<16x32xf32> to vector<1x16x32xf32>
    tpu.vector_store %arg9[%c0_21, %50, %c0_22], %53 {strides = array<i32>} : memref<1x16x32xf32, #tpu.memory_space<vmem>>, vector<1x16x32xf32>,
    %c1_i32 = arith.constant 1 : i32
    return
  }
  func.func @transform_0(%arg0: i32, %arg1: i32) -> (i32, i32, i32) {
    %c0_i32 = arith.constant 0 : i32
    %c0_i32_0 = arith.constant 0 : i32
    return %arg0, %arg1, %c0_i32 : i32, i32, i32
  }
  func.func @transform_1(%arg0: i32, %arg1: i32) -> (i32, i32) {
    %c0_i32 = arith.constant 0 : i32
    %c0_i32_0 = arith.constant 0 : i32
    %c0_i32_1 = arith.constant 0 : i32
    return %c0_i32, %c0_i32_0 : i32, i32
  }
  func.func @transform_2(%arg0: i32, %arg1: i32) -> (i32, i32) {
    %c0_i32 = arith.constant 0 : i32
    %c0_i32_0 = arith.constant 0 : i32
    %c0_i32_1 = arith.constant 0 : i32
    return %c0_i32, %c0_i32_0 : i32, i32
  }
  func.func @transform_3(%arg0: i32, %arg1: i32) -> (i32, i32) {
    %c0_i32 = arith.constant 0 : i32
    %c0_i32_0 = arith.constant 0 : i32
    %c0_i32_1 = arith.constant 0 : i32
    return %c0_i32, %c0_i32_0 : i32, i32
  }
  func.func @transform_4(%arg0: i32, %arg1: i32) -> (i32, i32) {
    %c0_i32 = arith.constant 0 : i32
    %c0_i32_0 = arith.constant 0 : i32
    %c0_i32_1 = arith.constant 0 : i32
    return %c0_i32, %c0_i32_0 : i32, i32
  }
  func.func @transform_5(%arg0: i32, %arg1: i32) -> (i32, i32) {
    %c0_i32 = arith.constant 0 : i32
    %c0_i32_0 = arith.constant 0 : i32
    %c0_i32_1 = arith.constant 0 : i32
    return %c0_i32, %c0_i32_0 : i32, i32
  }
  func.func @transform_6(%arg0: i32, %arg1: i32) -> (i32, i32) {
    %c0_i32 = arith.constant 0 : i32
    %c0_i32_0 = arith.constant 0 : i32
    %c0_i32_1 = arith.constant 0 : i32
    return %c0_i32, %c0_i32_0 : i32, i32
  }
  func.func @transform_7(%arg0: i32, %arg1: i32) -> (i32, i32, i32) {
    %c0_i32 = arith.constant 0 : i32
    %c0_i32_0 = arith.constant 0 : i32
    return %arg0, %arg1, %c0_i32 : i32, i32, i32
  }
}

module attributes {stable_mosaic.version = 11 : i64} {
  func.func @ffn_kernel(%arg0: i32, %arg1: i32, %arg2: memref<1x16x32xf32, #tpu.memory_space<vmem>>, %arg3: memref<1x32xf32, #tpu.memory_space<vmem>>, %arg4: memref<1x32xf32, #tpu.memory_space<vmem>>, %arg5: memref<32x128xbf16, #tpu.memory_space<vmem>>, %arg6: memref<1x128xf32, #tpu.memory_space<vmem>>, %arg7: memref<128x32xbf16, #tpu.memory_space<vmem>>, %arg8: memref<1x32xf32, #tpu.memory_space<vmem>>, %arg9: memref<1x16x32xf32, #tpu.memory_space<vmem>>) attributes {dimension_semantics = [#tpu.dimension_semantics<parallel>, #tpu.dimension_semantics<parallel>], iteration_bounds = array<i64: 2, 1>, scalar_prefetch = 0 : i64, scratch_operands = 0 : i64, tpu.core_type = #tpu.core_type<tc>, window_params = [{transform_indices = @transform_0, window_bounds = array<i64: 1, 16, 32>}, {pipeline_mode = #tpu.pipeline_mode<synchronous>, transform_indices = @transform_1, window_bounds = array<i64: 1, 32>}, {pipeline_mode = #tpu.pipeline_mode<synchronous>, transform_indices = @transform_2, window_bounds = array<i64: 1, 32>}, {pipeline_mode = #tpu.pipeline_mode<synchronous>, transform_indices = @transform_3, window_bounds = array<i64: 32, 128>}, {pipeline_mode = #tpu.pipeline_mode<synchronous>, transform_indices = @transform_4, window_bounds = array<i64: 1, 128>}, {pipeline_mode = #tpu.pipeline_mode<synchronous>, transform_indices = @transform_5, window_bounds = array<i64: 128, 32>}, {pipeline_mode = #tpu.pipeline_mode<synchronous>, transform_indices = @transform_6, window_bounds = array<i64: 1, 32>}, {transform_indices = @transform_7, window_bounds = array<i64: 1, 16, 32>}]} {
    %c0 = arith.constant 0 : index
    %c0_0 = arith.constant 0 : index
    %0 = vector.load %arg3[%c0, %c0_0] : memref<1x32xf32, #tpu.memory_space<vmem>>, vector<1x32xf32>
    %c0_1 = arith.constant 0 : index
    %c0_2 = arith.constant 0 : index
    %1 = vector.load %arg4[%c0_1, %c0_2] : memref<1x32xf32, #tpu.memory_space<vmem>>, vector<1x32xf32>
    %c0_3 = arith.constant 0 : index
    %c0_4 = arith.constant 0 : index
    %2 = vector.load %arg6[%c0_3, %c0_4] : memref<1x128xf32, #tpu.memory_space<vmem>>, vector<1x128xf32>
    %c0_5 = arith.constant 0 : index
    %c0_6 = arith.constant 0 : index
    %3 = vector.load %arg8[%c0_5, %c0_6] : memref<1x32xf32, #tpu.memory_space<vmem>>, vector<1x32xf32>
    %c0_i32 = arith.constant 0 : i32
    %c16_i32 = arith.constant 16 : i32
    %4 = arith.muli %c0_i32, %c16_i32 : i32
    %5 = tpu.assume_multiple %4, 16 : i32
    %c0_7 = arith.constant 0 : index
    %6 = arith.index_cast %5 : i32 to index
    %c0_8 = arith.constant 0 : index
    %7 = vector.load %arg2[%c0_7, %6, %c0_8] : memref<1x16x32xf32, #tpu.memory_space<vmem>>, vector<1x16x32xf32>
    %8 = vector.shape_cast %7 : vector<1x16x32xf32> to vector<16x32xf32>
    %cst = arith.constant dense<0.000000e+00> : vector<16xf32>
    %9 = vector.multi_reduction <add>, %8, %cst [1] : vector<16x32xf32> to vector<16xf32>
    %10 = vector.shape_cast %9 : vector<16xf32> to vector<16x1xf32>
    %cst_9 = arith.constant 3.200000e+01 : f32
    %11 = vector.broadcast %cst_9 : f32 to vector<16x1xf32>
    %12 = arith.divf %10, %11 : vector<16x1xf32>
    %13 = vector.broadcast %12 : vector<16x1xf32> to vector<16x32xf32>
    %14 = arith.subf %8, %13 : vector<16x32xf32>
    %15 = arith.mulf %14, %14 : vector<16x32xf32>
    %cst_10 = arith.constant dense<0.000000e+00> : vector<16xf32>
    %16 = vector.multi_reduction <add>, %15, %cst_10 [1] : vector<16x32xf32> to vector<16xf32>
    %17 = vector.shape_cast %16 : vector<16xf32> to vector<16x1xf32>
    %cst_11 = arith.constant 3.200000e+01 : f32
    %18 = vector.broadcast %cst_11 : f32 to vector<16x1xf32>
    %19 = arith.divf %17, %18 : vector<16x1xf32>
    %cst_12 = arith.constant 9.99999974E-6 : f32
    %20 = vector.broadcast %cst_12 : f32 to vector<16x1xf32>
    %21 = arith.addf %19, %20 : vector<16x1xf32>
    %22 = math.rsqrt %21 : vector<16x1xf32>
    %23 = vector.broadcast %22 : vector<16x1xf32> to vector<16x32xf32>
    %24 = arith.mulf %14, %23 : vector<16x32xf32>
    %25 = vector.broadcast %0 : vector<1x32xf32> to vector<16x32xf32>
    %26 = arith.mulf %24, %25 : vector<16x32xf32>
    %27 = vector.broadcast %1 : vector<1x32xf32> to vector<16x32xf32>
    %28 = arith.addf %26, %27 : vector<16x32xf32>
    %29 = arith.truncf %28 : vector<16x32xf32> to vector<16x32xbf16>
    %c0_13 = arith.constant 0 : index
    %c0_14 = arith.constant 0 : index
    %30 = vector.load %arg5[%c0_13, %c0_14] : memref<32x128xbf16, #tpu.memory_space<vmem>>, vector<32x128xbf16>
    %cst_15 = arith.constant dense<0.000000e+00> : vector<16x128xf32>
    %31 = tpu.matmul %29, %30, %cst_15 {dimension_numbers = #tpu.dot_dimension_numbers<[1], [0], [0], [1], [0, 0, 1, 1], [], []>} : vector<16x32xbf16>, vector<32x128xbf16>, vector<16x128xf32> -> vector<16x128xf32>
    %32 = vector.broadcast %2 : vector<1x128xf32> to vector<16x128xf32>
    %33 = arith.addf %31, %32 : vector<16x128xf32>
    %cst_16 = arith.constant 0.000000e+00 : f32
    %34 = vector.broadcast %cst_16 : f32 to vector<16x128xf32>
    %35 = arith.subf %34, %33 : vector<16x128xf32>
    %36 = math.exp %35 : vector<16x128xf32>
    %cst_17 = arith.constant 1.000000e+00 : f32
    %37 = vector.broadcast %cst_17 : f32 to vector<16x128xf32>
    %38 = arith.addf %37, %36 : vector<16x128xf32>
    %39 = tpu.reciprocal %38 {approx = true} : vector<16x128xf32> -> vector<16x128xf32>
    %40 = arith.mulf %33, %39 : vector<16x128xf32>
    %41 = arith.truncf %40 : vector<16x128xf32> to vector<16x128xbf16>
    %c0_18 = arith.constant 0 : index
    %c0_19 = arith.constant 0 : index
    %42 = vector.load %arg7[%c0_18, %c0_19] : memref<128x32xbf16, #tpu.memory_space<vmem>>, vector<128x32xbf16>
    %cst_20 = arith.constant dense<0.000000e+00> : vector<16x32xf32>
    %43 = tpu.matmul %41, %42, %cst_20 {dimension_numbers = #tpu.dot_dimension_numbers<[1], [0], [0], [1], [0, 0, 1, 1], [], []>} : vector<16x128xbf16>, vector<128x32xbf16>, vector<16x32xf32> -> vector<16x32xf32>
    %44 = vector.broadcast %3 : vector<1x32xf32> to vector<16x32xf32>
    %45 = arith.addf %43, %44 : vector<16x32xf32>
    %c0_21 = arith.constant 0 : index
    %46 = arith.index_cast %5 : i32 to index
    %c0_22 = arith.constant 0 : index
    %47 = vector.load %arg9[%c0_21, %46, %c0_22] : memref<1x16x32xf32, #tpu.memory_space<vmem>>, vector<1x16x32xf32>
    %48 = vector.shape_cast %47 : vector<1x16x32xf32> to vector<16x32xf32>
    %49 = vector.shape_cast %45 : vector<16x32xf32> to vector<1x16x32xf32>
    tpu.vector_store %arg9[%c0_21, %46, %c0_22], %49 {strides = array<i32>} : memref<1x16x32xf32, #tpu.memory_space<vmem>>, vector<1x16x32xf32>,
    %c1_i32 = arith.constant 1 : i32
    return
  }
  func.func @transform_0(%arg0: i32, %arg1: i32) -> (i32, i32, i32) {
    %c0_i32 = arith.constant 0 : i32
    %c0_i32_0 = arith.constant 0 : i32
    return %arg0, %arg1, %c0_i32 : i32, i32, i32
  }
  func.func @transform_1(%arg0: i32, %arg1: i32) -> (i32, i32) {
    %c0_i32 = arith.constant 0 : i32
    %c0_i32_0 = arith.constant 0 : i32
    %c0_i32_1 = arith.constant 0 : i32
    return %c0_i32, %c0_i32_0 : i32, i32
  }
  func.func @transform_2(%arg0: i32, %arg1: i32) -> (i32, i32) {
    %c0_i32 = arith.constant 0 : i32
    %c0_i32_0 = arith.constant 0 : i32
    %c0_i32_1 = arith.constant 0 : i32
    return %c0_i32, %c0_i32_0 : i32, i32
  }
  func.func @transform_3(%arg0: i32, %arg1: i32) -> (i32, i32) {
    %c0_i32 = arith.constant 0 : i32
    %c0_i32_0 = arith.constant 0 : i32
    %c0_i32_1 = arith.constant 0 : i32
    return %c0_i32, %c0_i32_0 : i32, i32
  }
  func.func @transform_4(%arg0: i32, %arg1: i32) -> (i32, i32) {
    %c0_i32 = arith.constant 0 : i32
    %c0_i32_0 = arith.constant 0 : i32
    %c0_i32_1 = arith.constant 0 : i32
    return %c0_i32, %c0_i32_0 : i32, i32
  }
  func.func @transform_5(%arg0: i32, %arg1: i32) -> (i32, i32) {
    %c0_i32 = arith.constant 0 : i32
    %c0_i32_0 = arith.constant 0 : i32
    %c0_i32_1 = arith.constant 0 : i32
    return %c0_i32, %c0_i32_0 : i32, i32
  }
  func.func @transform_6(%arg0: i32, %arg1: i32) -> (i32, i32) {
    %c0_i32 = arith.constant 0 : i32
    %c0_i32_0 = arith.constant 0 : i32
    %c0_i32_1 = arith.constant 0 : i32
    return %c0_i32, %c0_i32_0 : i32, i32
  }
  func.func @transform_7(%arg0: i32, %arg1: i32) -> (i32, i32, i32) {
    %c0_i32 = arith.constant 0 : i32
    %c0_i32_0 = arith.constant 0 : i32
    return %arg0, %arg1, %c0_i32 : i32, i32, i32
  }
}

</mosaic_0001>

<bundles_post_ra>
// kernel: tpu_custom_call.1
= control target key start
LH: loop header
LB: loop body
LE: loop exit
PB: predicated region body
PF: predicated region fallthrough
CT: control target
= control target key end

     0   :  { %12 = vsyncpa [#allocation3], 0  ;;  %s1038_s0 = inlined_call_operand.vmem [shape: f32[2,16,32], index: 0, kind: input, shape index: {}]   ;;  %s1039_s1 = inlined_call_operand.vmem [shape: f32[1,32], index: 1, kind: input, shape index: {}]   ;;  %s1040_s2 = inlined_call_operand.vmem [shape: f32[1,32], index: 2, kind: input, shape index: {}]   ;;  %s1041_s3 = inlined_call_operand.vmem [shape: bf16[32,128], index: 3, kind: input, shape index: {}]   ;;  %s1042_s4 = inlined_call_operand.vmem [shape: f32[1,128], index: 4, kind: input, shape index: {}]   ;;  %s1043_s5 = inlined_call_operand.vmem [shape: bf16[128,32], index: 5, kind: input, shape index: {}]   ;;  %s1044_s6 = inlined_call_operand.vmem [shape: f32[1,32], index: 6, kind: input, shape index: {}]   ;;  %s1045_s7 = inlined_call_operand.hbm [shape: f32[2,16,32], index: 7, kind: output, shape index: {}]  }
   0x1   :  { %14 = vsyncpa [#allocation3 + $0x1], 0  ;;  %s892_s24 = smov 0   ;;  %s894_s25 = smov 0  }
   0x2   :  { %s896_s26 = smov 0   ;;  %s898_s27 = smov 0  }
   0x3   :  { %s900_s28 = smov 0   ;;  %s902_s29 = smov 0  }
   0x4 LB: > { %s628_s30 = sadd.s32 4294967295, %s847_s29   ;;  %s629_s8 = sadd.s32 4294967294, %s847_s29   ;;  %s847_s29 = sphi %s902_s29, %s20_s29   ;;  %s843_s28 = sphi %s900_s28, %s1052_s28   ;;  %s839_s27 = sphi %s898_s27, %s1051_s27   ;;  %s835_s26 = sphi %s896_s26, %s1050_s26   ;;  %s831_s25 = sphi %s894_s25, %s1049_s25   ;;  %s827_s24 = sphi %s892_s24, %s1048_s24  }
   0x5   : > { %s32_s9 = sadd.s32 1, %s843_s28  ;;  %s195_s10 = sadd.s32 1, %s835_s26 }
   0x6   : > { %p34_p0 = scmp.ge.s32.totalorder %s32_s9, 2  ;;  %p205_p1 = scmp.ne.s32.totalorder %s835_s26, %s831_s25 }
   0x7   : > { %p206_p2 = scmp.eq.s32.totalorder %s628_s30, 1  ;;  %p211_p3 = scmp.ne.s32.totalorder %s831_s25, %s827_s24 }
   0x8   : > { %s1054_s9 = smov (%p34_p0, %s32_s9), 0  ;;  %p212_p5 = scmp.eq.s32.totalorder %s629_s8, 1 }
   0x9   : > { %p932_p4 = por %p206_p2, %p205_p1  ;;  %s190_s12 = ssub.s32 %s843_s28, %s1054_s9 }
   0xa   : > { %p632_p6 = scmp.ge.s32.totalorder %s847_s29, 1  ;;  %p193_p7 = scmp.eq.s32.totalorder %s190_s12, 0 }
   0xb   : > { %p939_p8 = por %p212_p5, %p211_p3  ;;  %p261_p9 = scmp.lt.s32.totalorder %s847_s29, 3 }
   0xc   : > { %s945_s14 = scalar_select %p193_p7, %s835_s26, %s195_s10  }
   0xd   : > { %p262_p10 = pnand %p632_p6, %p261_p9 }
   0xe   : > { %p298_p11 = scmp.lt.s32.totalorder (!%p262_p10), %s839_s27, 1  ;;  %s294_s20 = sand.u32 (!%p262_p10), 1, %s831_s25  }
   0xf   : > { %265 = sbr.rel (%p262_p10) target bundleno = 619 (0x26b), region = 48  ;;  %s633_s21 = sshll.u32 (!%p262_p10), %s294_s20, 4 }
  0x10   : > { %s693_s30 = sshll.u32 (!%p262_p10), %s839_s27, 4  ;;  %s532_s18 = scalar_lea.sflag (!%p262_p10), [#allocation3], %s294_s20 }
  0x11   : > { %s545_s12 = scalar_lea.hbm (!%p262_p10), %s1045_s7, %s693_s30  ;;  %s789_s23 = scalar_lea.hbm (!%p262_p10), %s1045_s7, 32 }
  0x12   : > { %s548_s17 = sshll.u32 (!%p262_p10), %s545_s12, 4  ;;  %s549_s17 = int_to_ptr.hbm [resolvable:$true] %s548_s17 }
  0x14   : > { %s299_s15 = scalar_select %p298_p11, %s839_s27, 1  ;;  %vm316_vm0 = vcmask 261120   ;;  %v849_v4 = vmov 32.0   ;;  %v684_v21 = vld [vmem:[%s1041_s3 + $0x8] sm:$0xff]  ;;  %v683_v23 = vld [vmem:[%s1041_s3] sm:$0xff]  ;;  %v692_v53 = vld [vmem:[%s1043_s5 + $0x38] sm:$0xff] }
  0x15   : > { %755 = vrcp.f32 %v849_v4  ;;  %404 = vmatpush.bf16.msra.mxu0 %v684_v21  ;;  %v752_v42 = vld [vmem:[%s1039_s1] ss:$0 sm:$0xff]  ;;  %515 = vmatpush.bf16.msra.mxu1 %v692_v53  ;;  %v691_v55 = vld [vmem:[%s1043_s5 + $0x30] sm:$0xff]  ;;  %v690_v57 = vld [vmem:[%s1043_s5 + $0x28] sm:$0xff]  ;;  %s783_s27 = sshra.s32 %s549_s17, 4  ;;  %s784_s27 = int_to_ptr.hbm [resolvable:$true] %s783_s27 }
  0x16   : > { %s682_s16 = sshll.u32 %s299_s15, 4  ;;  %v753_v47 = vld [vmem:[%s1040_s2] ss:$0 sm:$0xff]  ;;  %v688_v63 = vld [vmem:[%s1043_s5 + $0x18] sm:$0xff]  ;;  %s296_s15 = scalar_lea.vmem [#allocation2], %s633_s21 }
  0x17   : > { %s305_s19 = scalar_lea.vmem %s1038_s0, %s682_s16  ;;  %v311_v52 = vld [vmem:[%s1042_s4] sm:$0x1]  ;;  %s546_s16 = sshll.u32 %s296_s15, 4  ;;  %s547_s16 = int_to_ptr.vmem [resolvable:$true] %s546_s16 }
  0x18   : > { %v314_v0 = vld [vmem:[%s305_s19] sm:$0xff]  ;;  %v315_v2 = vld [vmem:[%s305_s19 + $0x8] sm:$0xff]  ;;  %v312_v54 = vpack.c.bf16 %v311_v52, %v311_v52  ;;  %s785_s19 = scalar_lea.hbm %s784_s27, 16  ;;  %p790_p1 = scmp.lt.s32.totalorder %s784_s27, %s1045_s7 }
  0x19   : > { %v317_v1 = vsel %vm316_vm0, %v314_v0, 0.0  ;;  %v320_v3 = vsel %vm316_vm0, %v315_v2, 0.0  ;;  %405 = vmatpush.bf16.msra.mxu0 %v683_v23  ;;  %516 = vmatpush.bf16.msra.mxu1 %v691_v55  ;;  %v689_v59 = vld [vmem:[%s1043_s5 + $0x20] sm:$0xff]  ;;  %p786_p12 = scmp.ne.s32.totalorder %s784_s27, %s785_s19  ;;  %p791_p2 = scmp.lt.s32.totalorder %s789_s23, %s785_s19 }
  0x1a   : > { %318 = vadd.xlane.f32.xlu0 %v317_v1  ;;  %v415_v56 = vpack.i.b16 %v312_v54, %v312_v54 }
  0x1b   : > { %v756_v5 = vpop.eup %755  ;;  %p787_p13 = pnand %p786_p12, %p932_p4  ;;  %p792_p3 = por %p791_p2, %p790_p1 }
  0x1c   : > { %v324_v6 = vmul.f32 32.0, %v756_v5  ;;  %vm328_vm1 = vweird.f32 %v756_v5  ;;  %v417_v58 = vperm.slane %v415_v56, 0 }
  0x1d   : > { %517 = vmatpush.bf16.msra.mxu1 %v690_v57  ;;  %p788_p0 = pneg %p787_p13 }
  0x1e   : > { %v325_v7 = vsub.f32 1.0, %v324_v6  ;;  %v420_v62 = vunpack.c.l.bf16 %v417_v58 }
  0x1f   : > { %p793_p5 = pnand %p792_p3, %p788_p0 }
  0x20   : > { %v326_v8 = vmul.f32 %v756_v5, %v325_v7 }
  0x21   : > { %518 = vmatpush.bf16.msra.mxu1 %v689_v59 }
  0x22   : > { %321 = vadd.xlane.f32.xlu0 %v320_v3  ;;  %v327_v9 = vadd.f32 %v756_v5, %v326_v8 }
  0x24   : > { %v329_v10 = vsel %vm328_vm1, %v756_v5, %v327_v9  ;;  %v686_v5 = vld [vmem:[%s1043_s5 + $0x8] sm:$0xff] }
  0x25   : > { %519 = vmatpush.bf16.msra.mxu1 %v688_v63 }
  0x8d   : > { %v319_v11 = vpop.xlane.xlu0 %318 }
  0x8e   : > { %v330_v12 = vmul.f32 %v329_v10, %v319_v11 }
  0x90   : > { %v332_v13 = vsub.f32 %v314_v0, %v330_v12 }
  0x92   : > { %v334_v14 = vmul.f32 %v332_v13, %v332_v13 }
  0x94   : > { %v336_v15 = vsel %vm316_vm0, %v334_v14, 0.0 }
  0x95   : > { %337 = vadd.xlane.f32.xlu1 %v336_v15  ;;  %v322_v16 = vpop.xlane.xlu0 %321 }
  0x96   : > { %v331_v17 = vmul.f32 %v329_v10, %v322_v16 }
  0x98   : > { %v333_v18 = vsub.f32 %v315_v2, %v331_v17  ;;  %v687_v2 = vld [vmem:[%s1043_s5 + $0x10] sm:$0xff] }
  0x99   : > { %520 = vmatpush.bf16.msra.mxu1 %v687_v2 }
  0x9a   : > { %v335_v19 = vmul.f32 %v333_v18, %v333_v18 }
  0x9c   : > { %v339_v20 = vsel %vm316_vm0, %v335_v19, 0.0 }
  0x9d   : > { %340 = vadd.xlane.f32.xlu1 %v339_v20  ;;  %521 = vmatpush.bf16.msra.mxu1 %v686_v5 }
 0x108   : > { %v338_v22 = vpop.xlane.xlu1 %337 }
 0x109   : > { %v342_v24 = vmul.f32 %v338_v22, %v329_v10 }
 0x10b   : > { %v344_v25 = vadd.f32 1e-05, %v342_v24 }
 0x10d   : > { %757 = vrsqrt.f32 %v344_v25  ;;  %vm352_vm3 = vweird.f32 %v344_v25 }
 0x110   : > { %v341_v26 = vpop.xlane.xlu1 %340 }
 0x111   : > { %v343_v27 = vmul.f32 %v341_v26, %v329_v10  ;;  %v685_v10 = vld [vmem:[%s1043_s5] sm:$0xff] }
 0x112   : > { %522 = vmatpush.bf16.msra.mxu1 %v685_v10 }
 0x113   : > { %v758_v28 = vpop.eup %757  ;;  %v345_v29 = vadd.f32 1e-05, %v343_v27 }
 0x114   : > { %v347_v30 = vmul.f32 %v758_v28, %v344_v25  ;;  %vm353_vm2 = vweird.f32 %v758_v28 }
 0x115   : > { %759 = vrsqrt.f32 %v345_v29  ;;  %vm354_vm4 = vmor %vm352_vm3, %vm353_vm2  ;;  %vm362_vm6 = vweird.f32 %v345_v29 }
 0x116   : > { %v348_v31 = vmul.f32 %v758_v28, %v347_v30 }
 0x118   : > { %v349_v32 = vmul.f32 0.5, %v348_v31 }
 0x11a   : > { %v350_v33 = vsub.f32 1.5, %v349_v32 }
 0x11b   : > { %v760_v34 = vpop.eup %759 }
 0x11c   : > { %v351_v35 = vmul.f32 %v758_v28, %v350_v33  ;;  %v357_v36 = vmul.f32 %v760_v34, %v345_v29  ;;  %vm363_vm5 = vweird.f32 %v760_v34 }
 0x11d   : > { %vm364_vm7 = vmor %vm362_vm6, %vm363_vm5 }
 0x11e   : > { %v358_v37 = vmul.f32 %v760_v34, %v357_v36  ;;  %v355_v38 = vsel %vm354_vm4, %v758_v28, %v351_v35 }
 0x11f   : > { %v366_v41 = vmul.f32 %v355_v38, %v332_v13 }
 0x120   : > { %v359_v39 = vmul.f32 0.5, %v358_v37 }
 0x121   : > { %v371_v46 = vmul.f32 %v752_v42, %v366_v41 }
 0x122   : > { %v360_v40 = vsub.f32 1.5, %v359_v39 }
 0x123   : > { %v376_v49 = vadd.f32 %v753_v47, %v371_v46 }
 0x124   : > { %v361_v43 = vmul.f32 %v760_v34, %v360_v40 }
 0x126   : > { %v365_v44 = vsel %vm364_vm7, %v760_v34, %v361_v43  ;;  %v754_v34 = vld [vmem:[%s1044_s6] ss:$0 sm:$0xff] }
 0x127   : > { %v367_v45 = vmul.f32 %v365_v44, %v333_v18 }
 0x129   : > { %v372_v48 = vmul.f32 %v752_v42, %v367_v45 }
 0x12b   : > { %v377_v50 = vadd.f32 %v753_v47, %v372_v48 }
 0x12d   : > { %v378_v51 = vpack.c.bf16 %v377_v50, %v376_v49 }
 0x12f   : > { %644 = vmatmul.msk.bf16.vlgmr.msra.gmra.mxu0 %vm316_vm0, %v378_v51 }
 0x1ac   : > { %v407_v60 = vpop.f32.mrf.mxu0 }
 0x1ad   : > { %v412_v61 = vpack.c.bf16 %v407_v60, %v407_v60 }
 0x1af   : > { %v418_v0 = vunpack.c.l.bf16 %v412_v61 }
 0x1b1   : > { %v421_v1 = vadd.f32 %v420_v62, %v418_v0 }
 0x1b3   : > { %v423_v3 = vpack.c.bf16 %v421_v1, %v421_v1 }
 0x1b4   : > { %v409_v4 = vpop.f32.mrf.mxu0 }
 0x1b5   : > { %v425_v6 = vunpack.c.l.bf16 %v423_v3  ;;  %v413_v7 = vpack.c.bf16 %v409_v4, %v409_v4 }
 0x1b7   : > { %v427_v8 = vsub.f32 0.0, %v425_v6  ;;  %v419_v9 = vunpack.c.l.bf16 %v413_v7 }
 0x1b9   : > { %v429_v11 = vpack.c.bf16 %v427_v8, %v427_v8  ;;  %v422_v12 = vadd.f32 %v420_v62, %v419_v9 }
 0x1bb   : > { %v431_v13 = vunpack.c.l.bf16 %v429_v11  ;;  %v424_v14 = vpack.c.bf16 %v422_v12, %v422_v12 }
 0x1bd   : > { %v433_v15 = vmul.f32 1.442695, %v431_v13  ;;  %v426_v16 = vunpack.c.l.bf16 %v424_v14 }
 0x1bf   : > { %761 = vpow2.f32 %v433_v15  ;;  %v428_v17 = vsub.f32 0.0, %v426_v16 }
 0x1c1   : > { %v430_v18 = vpack.c.bf16 %v428_v17, %v428_v17 }
 0x1c3   : > { %v432_v19 = vunpack.c.l.bf16 %v430_v18 }
 0x1c5   : > { %v762_v20 = vpop.eup %761  ;;  %v435_v21 = vmul.f32 1.442695, %v432_v19 }
 0x1c6   : > { %v437_v22 = vpack.c.bf16 %v762_v20, %v762_v20 }
 0x1c7   : > { %763 = vpow2.f32 %v435_v21 }
 0x1c8   : > { %v439_v23 = vunpack.c.l.bf16 %v437_v22 }
 0x1ca   : > { %v441_v25 = vadd.f32 1.0, %v439_v23 }
 0x1cc   : > { %765 = vrcp.f32 %v441_v25 }
 0x1cd   : > { %v764_v24 = vpop.eup %763 }
 0x1ce   : > { %v438_v26 = vpack.c.bf16 %v764_v24, %v764_v24 }
 0x1d0   : > { %v440_v27 = vunpack.c.l.bf16 %v438_v26 }
 0x1d2   : > { %v442_v28 = vadd.f32 1.0, %v440_v27  ;;  %v766_v29 = vpop.eup %765 }
 0x1d3   : > { %v445_v31 = vmul.f32 %v766_v29, %v425_v6 }
 0x1d4   : > { %767 = vrcp.f32 %v442_v28 }
 0x1da   : > { %v768_v30 = vpop.eup %767 }
 0x1db   : > { %v446_v32 = vmul.f32 %v768_v30, %v426_v16 }
 0x1dd   : > { %v447_v33 = vpack.c.bf16 %v446_v32, %v445_v31 }
 0x1df   : > { %523 = vmatmul.bf16.vlgmr.msra.gmra.mxu1 %v447_v33 }
 0x25c   : > { %v524_v35 = vpop.f32.mrf.mxu1 }
 0x25d   : > { %v525_v36 = vadd.f32 %v754_v34, %v524_v35 }
 0x25f   : > { %529 = vst.msk [vmem:[%s296_s15] sm:$0xff] %vm316_vm0, %v525_v36 }
 0x264   : > { %v526_v37 = vpop.f32.mrf.mxu1 }
 0x265   : > { %v527_v38 = vadd.f32 %v754_v34, %v526_v37 }
 0x267   : > { %530 = vst.msk [vmem:[%s296_s15 + $0x8] sm:$0xff] %vm316_vm0, %v527_v38 }
 0x268   : > { %796 = shalt.err (!%p793_p5)
}
 0x269   : > { %s850_s20 = smov 128   ;;  %s851_s10 = smov 8  }
 0x26a   : > { %694 = dma.vmem_to_hbm [thread:$0]  (%p932_p4), %s547_s16, 256, %s549_s17, %s532_s18, %s850_s20, %s850_s20, %s851_s10  }
 0x26b PF: > { %p700_p6 = scmp.ge.s32.totalorder %s847_s29, 2  ;;  %s563_s12 = sand.u32 1, %s827_s24  }
 0x26c   : > { %s564_s15 = scalar_lea.sflag [#allocation3], %s563_s12 }
 0x26d   : > { %p697_p7 = pnand %p700_p6, %p939_p8 }
 0x26f   : > { %p698_p9 = pneg %p697_p7 }
 0x271   : > { %822 = dma.done.wait (%p698_p9), %s564_s15, 256  }
 0x272   : > { %824 = vsyncadd (%p698_p9), %s564_s15, 4294967040  ;;  %s20_s29 = sadd.s32 1, %s847_s29   ;;  %s1048_s24 = smov %s831_s25 }
 0x273   : > { %p17_p10 = scmp.ge.s32.totalorder %s20_s29, 4   ;;  %s1049_s25 = smov %s835_s26 }
 0x274   : > { %s1050_s26 = smov %s945_s14  ;;  %s1051_s27 = smov %s843_s28 }
 0x275   : > { %s1052_s28 = smov %s1054_s9  ;;  %19 = sbr.rel (!%p17_p10) target bundleno = 4 (0x4), region = 83 }
 0x27a   :  { %570 = vsyncpa [#allocation3], 1 }
 0x27b   :  { %572 = vsyncpa [#allocation3 + $0x1], 1 }

// kernel: tpu_custom_call.1
= control target key start
LH: loop header
LB: loop body
LE: loop exit
PB: predicated region body
PF: predicated region fallthrough
CT: control target
= control target key end

     0   :  { %12 = vsyncpa [#allocation3], 0  ;;  %s1018_s0 = inlined_call_operand.vmem [shape: f32[2,16,32], index: 0, kind: input, shape index: {}]   ;;  %s1019_s1 = inlined_call_operand.vmem [shape: f32[1,32], index: 1, kind: input, shape index: {}]   ;;  %s1020_s2 = inlined_call_operand.vmem [shape: f32[1,32], index: 2, kind: input, shape index: {}]   ;;  %s1021_s3 = inlined_call_operand.vmem [shape: bf16[32,128], index: 3, kind: input, shape index: {}]   ;;  %s1022_s4 = inlined_call_operand.vmem [shape: f32[1,128], index: 4, kind: input, shape index: {}]   ;;  %s1023_s5 = inlined_call_operand.vmem [shape: bf16[128,32], index: 5, kind: input, shape index: {}]   ;;  %s1024_s6 = inlined_call_operand.vmem [shape: f32[1,32], index: 6, kind: input, shape index: {}]   ;;  %s1025_s7 = inlined_call_operand.hbm [shape: f32[2,16,32], index: 7, kind: output, shape index: {}]  }
   0x1   :  { %14 = vsyncpa [#allocation3 + $0x1], 0  ;;  %s872_s24 = smov 0   ;;  %s874_s25 = smov 0  }
   0x2   :  { %s876_s26 = smov 0   ;;  %s878_s27 = smov 0  }
   0x3   :  { %s880_s28 = smov 0   ;;  %s882_s29 = smov 0  }
   0x4 LB: > { %s607_s30 = sadd.s32 4294967295, %s827_s29   ;;  %s608_s8 = sadd.s32 4294967294, %s827_s29   ;;  %s827_s29 = sphi %s882_s29, %s20_s29   ;;  %s823_s28 = sphi %s880_s28, %s1032_s28   ;;  %s819_s27 = sphi %s878_s27, %s1031_s27   ;;  %s815_s26 = sphi %s876_s26, %s1030_s26   ;;  %s811_s25 = sphi %s874_s25, %s1029_s25   ;;  %s807_s24 = sphi %s872_s24, %s1028_s24  }
   0x5   : > { %s32_s9 = sadd.s32 1, %s823_s28  ;;  %s195_s10 = sadd.s32 1, %s815_s26 }
   0x6   : > { %p34_p0 = scmp.ge.s32.totalorder %s32_s9, 2  ;;  %p205_p1 = scmp.ne.s32.totalorder %s815_s26, %s811_s25 }
   0x7   : > { %p206_p2 = scmp.eq.s32.totalorder %s607_s30, 1  ;;  %p211_p3 = scmp.ne.s32.totalorder %s811_s25, %s807_s24 }
   0x8   : > { %s1034_s9 = smov (%p34_p0, %s32_s9), 0  ;;  %p212_p5 = scmp.eq.s32.totalorder %s608_s8, 1 }
   0x9   : > { %p912_p4 = por %p206_p2, %p205_p1  ;;  %s190_s12 = ssub.s32 %s823_s28, %s1034_s9 }
   0xa   : > { %p611_p6 = scmp.ge.s32.totalorder %s827_s29, 1  ;;  %p193_p7 = scmp.eq.s32.totalorder %s190_s12, 0 }
   0xb   : > { %p919_p8 = por %p212_p5, %p211_p3  ;;  %p261_p9 = scmp.lt.s32.totalorder %s827_s29, 3 }
   0xc   : > { %s925_s14 = scalar_select %p193_p7, %s815_s26, %s195_s10  }
   0xd   : > { %p262_p10 = pnand %p611_p6, %p261_p9 }
   0xe   : > { %p298_p11 = scmp.lt.s32.totalorder (!%p262_p10), %s819_s27, 1  ;;  %s294_s20 = sand.u32 (!%p262_p10), 1, %s811_s25  }
   0xf   : > { %265 = sbr.rel (%p262_p10) target bundleno = 603 (0x25b), region = 48  ;;  %s612_s21 = sshll.u32 (!%p262_p10), %s294_s20, 4 }
  0x10   : > { %s672_s30 = sshll.u32 (!%p262_p10), %s819_s27, 4  ;;  %s511_s18 = scalar_lea.sflag (!%p262_p10), [#allocation3], %s294_s20 }
  0x11   : > { %s524_s12 = scalar_lea.hbm (!%p262_p10), %s1025_s7, %s672_s30  ;;  %s769_s23 = scalar_lea.hbm (!%p262_p10), %s1025_s7, 32 }
  0x12   : > { %s527_s17 = sshll.u32 (!%p262_p10), %s524_s12, 4  ;;  %s528_s17 = int_to_ptr.hbm [resolvable:$true] %s527_s17 }
  0x14   : > { %s299_s15 = scalar_select %p298_p11, %s819_s27, 1  ;;  %vm315_vm0 = vcmask 261120   ;;  %v829_v4 = vmov 32.0   ;;  %v663_v21 = vld [vmem:[%s1021_s3 + $0x8] sm:$0xff]  ;;  %v662_v23 = vld [vmem:[%s1021_s3] sm:$0xff]  ;;  %v671_v52 = vld [vmem:[%s1023_s5 + $0x38] sm:$0xff] }
  0x15   : > { %735 = vrcp.f32 %v829_v4  ;;  %406 = vmatpush.bf16.msra.mxu0 %v663_v21  ;;  %v731_v42 = vld [vmem:[%s1019_s1] ss:$0 sm:$0xff]  ;;  %494 = vmatpush.bf16.msra.mxu1 %v671_v52  ;;  %v670_v53 = vld [vmem:[%s1023_s5 + $0x30] sm:$0xff]  ;;  %v669_v54 = vld [vmem:[%s1023_s5 + $0x28] sm:$0xff]  ;;  %s763_s27 = sshra.s32 %s528_s17, 4  ;;  %s764_s27 = int_to_ptr.hbm [resolvable:$true] %s763_s27 }
  0x16   : > { %s661_s16 = sshll.u32 %s299_s15, 4  ;;  %v732_v47 = vld [vmem:[%s1020_s2] ss:$0 sm:$0xff]  ;;  %v667_v56 = vld [vmem:[%s1023_s5 + $0x18] sm:$0xff]  ;;  %v666_v57 = vld [vmem:[%s1023_s5 + $0x10] sm:$0xff]  ;;  %s296_s15 = scalar_lea.vmem [#allocation2], %s612_s21 }
  0x17   : > { %s305_s19 = scalar_lea.vmem %s1018_s0, %s661_s16  ;;  %v668_v55 = vld [vmem:[%s1023_s5 + $0x20] sm:$0xff]  ;;  %v665_v58 = vld [vmem:[%s1023_s5 + $0x8] sm:$0xff]  ;;  %s525_s16 = sshll.u32 %s296_s15, 4  ;;  %s526_s16 = int_to_ptr.vmem [resolvable:$true] %s525_s16 }
  0x18   : > { %v313_v0 = vld [vmem:[%s305_s19] sm:$0xff]  ;;  %v314_v2 = vld [vmem:[%s305_s19 + $0x8] sm:$0xff]  ;;  %s765_s19 = scalar_lea.hbm %s764_s27, 16  ;;  %p770_p1 = scmp.lt.s32.totalorder %s764_s27, %s1025_s7 }
  0x19   : > { %v316_v1 = vsel %vm315_vm0, %v313_v0, 0.0  ;;  %v319_v3 = vsel %vm315_vm0, %v314_v2, 0.0  ;;  %407 = vmatpush.bf16.msra.mxu0 %v662_v23  ;;  %495 = vmatpush.bf16.msra.mxu1 %v670_v53  ;;  %v733_v59 = vld [vmem:[%s1022_s4] ss:$0 sm:$0xff]  ;;  %p766_p12 = scmp.ne.s32.totalorder %s764_s27, %s765_s19  ;;  %p771_p2 = scmp.lt.s32.totalorder %s769_s23, %s765_s19 }
  0x1a   : > { %317 = vadd.xlane.f32.xlu0 %v316_v1  ;;  %v664_v60 = vld [vmem:[%s1023_s5] sm:$0xff] }
  0x1b   : > { %v736_v5 = vpop.eup %735  ;;  %p767_p13 = pnand %p766_p12, %p912_p4  ;;  %p772_p3 = por %p771_p2, %p770_p1 }
  0x1c   : > { %v323_v6 = vmul.f32 32.0, %v736_v5  ;;  %vm327_vm1 = vweird.f32 %v736_v5 }
  0x1d   : > { %496 = vmatpush.bf16.msra.mxu1 %v669_v54  ;;  %p768_p0 = pneg %p767_p13 }
  0x1e   : > { %v324_v7 = vsub.f32 1.0, %v323_v6 }
  0x1f   : > { %p773_p5 = pnand %p772_p3, %p768_p0 }
  0x20   : > { %v325_v8 = vmul.f32 %v736_v5, %v324_v7 }
  0x21   : > { %497 = vmatpush.bf16.msra.mxu1 %v668_v55 }
  0x22   : > { %320 = vadd.xlane.f32.xlu0 %v319_v3  ;;  %v326_v9 = vadd.f32 %v736_v5, %v325_v8 }
  0x24   : > { %v328_v10 = vsel %vm327_vm1, %v736_v5, %v326_v9 }
  0x25   : > { %498 = vmatpush.bf16.msra.mxu1 %v667_v56 }
  0x29   : > { %499 = vmatpush.bf16.msra.mxu1 %v666_v57 }
  0x2d   : > { %500 = vmatpush.bf16.msra.mxu1 %v665_v58 }
  0x31   : > { %501 = vmatpush.bf16.msra.mxu1 %v664_v60 }
  0x8d   : > { %v318_v11 = vpop.xlane.xlu0 %317 }
  0x8e   : > { %v329_v12 = vmul.f32 %v328_v10, %v318_v11 }
  0x90   : > { %v331_v13 = vsub.f32 %v313_v0, %v329_v12 }
  0x92   : > { %v333_v14 = vmul.f32 %v331_v13, %v331_v13 }
  0x94   : > { %v335_v15 = vsel %vm315_vm0, %v333_v14, 0.0  ;;  %v734_v14 = vld [vmem:[%s1024_s6] ss:$0 sm:$0xff] }
  0x95   : > { %336 = vadd.xlane.f32.xlu1 %v335_v15  ;;  %v321_v16 = vpop.xlane.xlu0 %320 }
  0x96   : > { %v330_v17 = vmul.f32 %v328_v10, %v321_v16 }
  0x98   : > { %v332_v18 = vsub.f32 %v314_v2, %v330_v17 }
  0x9a   : > { %v334_v19 = vmul.f32 %v332_v18, %v332_v18 }
  0x9c   : > { %v338_v20 = vsel %vm315_vm0, %v334_v19, 0.0 }
  0x9d   : > { %339 = vadd.xlane.f32.xlu1 %v338_v20 }
 0x108   : > { %v337_v22 = vpop.xlane.xlu1 %336 }
 0x109   : > { %v341_v24 = vmul.f32 %v337_v22, %v328_v10 }
 0x10b   : > { %v343_v25 = vadd.f32 1e-05, %v341_v24 }
 0x10d   : > { %737 = vrsqrt.f32 %v343_v25  ;;  %vm351_vm3 = vweird.f32 %v343_v25 }
 0x110   : > { %v340_v26 = vpop.xlane.xlu1 %339 }
 0x111   : > { %v342_v27 = vmul.f32 %v340_v26, %v328_v10 }
 0x113   : > { %v738_v28 = vpop.eup %737  ;;  %v344_v29 = vadd.f32 1e-05, %v342_v27 }
 0x114   : > { %v346_v30 = vmul.f32 %v738_v28, %v343_v25  ;;  %vm352_vm2 = vweird.f32 %v738_v28 }
 0x115   : > { %739 = vrsqrt.f32 %v344_v29  ;;  %vm353_vm4 = vmor %vm351_vm3, %vm352_vm2  ;;  %vm361_vm6 = vweird.f32 %v344_v29 }
 0x116   : > { %v347_v31 = vmul.f32 %v738_v28, %v346_v30 }
 0x118   : > { %v348_v32 = vmul.f32 0.5, %v347_v31 }
 0x11a   : > { %v349_v33 = vsub.f32 1.5, %v348_v32 }
 0x11b   : > { %v740_v34 = vpop.eup %739 }
 0x11c   : > { %v350_v35 = vmul.f32 %v738_v28, %v349_v33  ;;  %v356_v36 = vmul.f32 %v740_v34, %v344_v29  ;;  %vm362_vm5 = vweird.f32 %v740_v34 }
 0x11d   : > { %vm363_vm7 = vmor %vm361_vm6, %vm362_vm5 }
 0x11e   : > { %v357_v37 = vmul.f32 %v740_v34, %v356_v36  ;;  %v354_v38 = vsel %vm353_vm4, %v738_v28, %v350_v35 }
 0x11f   : > { %v365_v41 = vmul.f32 %v354_v38, %v331_v13 }
 0x120   : > { %v358_v39 = vmul.f32 0.5, %v357_v37 }
 0x121   : > { %v370_v46 = vmul.f32 %v731_v42, %v365_v41 }
 0x122   : > { %v359_v40 = vsub.f32 1.5, %v358_v39 }
 0x123   : > { %v375_v49 = vadd.f32 %v732_v47, %v370_v46 }
 0x124   : > { %v360_v43 = vmul.f32 %v740_v34, %v359_v40 }
 0x126   : > { %v364_v44 = vsel %vm363_vm7, %v740_v34, %v360_v43 }
 0x127   : > { %v366_v45 = vmul.f32 %v364_v44, %v332_v18 }
 0x129   : > { %v371_v48 = vmul.f32 %v731_v42, %v366_v45 }
 0x12b   : > { %v376_v50 = vadd.f32 %v732_v47, %v371_v48 }
 0x12d   : > { %v377_v51 = vpack.c.bf16 %v376_v50, %v375_v49 }
 0x12f   : > { %623 = vmatmul.msk.bf16.vlgmr.msra.gmra.mxu0 %vm315_vm0, %v377_v51 }
 0x1ac   : > { %v409_v61 = vpop.f32.mrf.mxu0 }
 0x1ad   : > { %v410_v62 = vadd.f32 %v733_v59, %v409_v61 }
 0x1af   : > { %v414_v63 = vsub.f32 0.0, %v410_v62 }
 0x1b1   : > { %v416_v0 = vmul.f32 1.442695, %v414_v63 }
 0x1b3   : > { %741 = vpow2.f32 %v416_v0 }
 0x1b4   : > { %v411_v1 = vpop.f32.mrf.mxu0 }
 0x1b5   : > { %v412_v2 = vadd.f32 %v733_v59, %v411_v1 }
 0x1b7   : > { %v415_v3 = vsub.f32 0.0, %v412_v2 }
 0x1b9   : > { %v418_v4 = vmul.f32 1.442695, %v415_v3  ;;  %v742_v5 = vpop.eup %741 }
 0x1ba   : > { %v420_v6 = vadd.f32 1.0, %v742_v5 }
 0x1bb   : > { %743 = vpow2.f32 %v418_v4 }
 0x1bc   : > { %745 = vrcp.f32 %v420_v6 }
 0x1c1   : > { %v744_v7 = vpop.eup %743 }
 0x1c2   : > { %v421_v8 = vadd.f32 1.0, %v744_v7  ;;  %v746_v9 = vpop.eup %745 }
 0x1c3   : > { %v424_v11 = vmul.f32 %v746_v9, %v410_v62 }
 0x1c4   : > { %747 = vrcp.f32 %v421_v8 }
 0x1ca   : > { %v748_v10 = vpop.eup %747 }
 0x1cb   : > { %v425_v12 = vmul.f32 %v748_v10, %v412_v2 }
 0x1cd   : > { %v426_v13 = vpack.c.bf16 %v425_v12, %v424_v11 }
 0x1cf   : > { %502 = vmatmul.bf16.vlgmr.msra.gmra.mxu1 %v426_v13 }
 0x24c   : > { %v503_v15 = vpop.f32.mrf.mxu1 }
 0x24d   : > { %v504_v16 = vadd.f32 %v734_v14, %v503_v15 }
 0x24f   : > { %508 = vst.msk [vmem:[%s296_s15] sm:$0xff] %vm315_vm0, %v504_v16 }
 0x254   : > { %v505_v17 = vpop.f32.mrf.mxu1 }
 0x255   : > { %v506_v18 = vadd.f32 %v734_v14, %v505_v17 }
 0x257   : > { %509 = vst.msk [vmem:[%s296_s15 + $0x8] sm:$0xff] %vm315_vm0, %v506_v18 }
 0x258   : > { %776 = shalt.err (!%p773_p5)
}
 0x259   : > { %s830_s20 = smov 128   ;;  %s831_s10 = smov 8  }
 0x25a   : > { %673 = dma.vmem_to_hbm [thread:$0]  (%p912_p4), %s526_s16, 256, %s528_s17, %s511_s18, %s830_s20, %s830_s20, %s831_s10  }
 0x25b PF: > { %p679_p6 = scmp.ge.s32.totalorder %s827_s29, 2  ;;  %s542_s12 = sand.u32 1, %s807_s24  }
 0x25c   : > { %s543_s15 = scalar_lea.sflag [#allocation3], %s542_s12 }
 0x25d   : > { %p676_p7 = pnand %p679_p6, %p919_p8 }
 0x25f   : > { %p677_p9 = pneg %p676_p7 }
 0x261   : > { %802 = dma.done.wait (%p677_p9), %s543_s15, 256  }
 0x262   : > { %804 = vsyncadd (%p677_p9), %s543_s15, 4294967040  ;;  %s20_s29 = sadd.s32 1, %s827_s29   ;;  %s1028_s24 = smov %s811_s25 }
 0x263   : > { %p17_p10 = scmp.ge.s32.totalorder %s20_s29, 4   ;;  %s1029_s25 = smov %s815_s26 }
 0x264   : > { %s1030_s26 = smov %s925_s14  ;;  %s1031_s27 = smov %s823_s28 }
 0x265   : > { %s1032_s28 = smov %s1034_s9  ;;  %19 = sbr.rel (!%p17_p10) target bundleno = 4 (0x4), region = 83 }
 0x26a   :  { %549 = vsyncpa [#allocation3], 1 }
 0x26b   :  { %551 = vsyncpa [#allocation3 + $0x1], 1 }

</bundles_post_ra>
